<compile_context>
chip_gen: v7x
topology: tpu7x:2x2x1
jax: 0.10.0
libtpu: 0.0.40
codegen_flags: <defaults>
</compile_context>

<pallas_src>
import jax
import jax.numpy as jnp
from jax.experimental import pallas as pl
from jax.experimental.pallas import tpu as pltpu

IN_FEATURES = 48
EMBEDDING_SIZE = 5
OUT_LANE = 8            # narrow, sublane-aligned output width (>= 5, pow-2)
SUBLANE = 8             # f32 sublane granularity
ROW_TILE = 4096         # rows per grid step at large N (multiple of 8)
MIN_ROW_TILE = 512      # never shrink below this (per-step overhead floor)
MIN_GRID_STEPS = 8      # keep both v7x TCs fed with >= 4 steps each
SMALL_N_BYTES = 1 << 20  # below ~1 MiB of x, plain XLA dot wins


def _round_up(v, m):
    return ((v + m - 1) // m) * m


def _linear_kernel(x_ref, w_ref, b_ref, o_ref):
    # x_ref: (tm, 48)  w_ref: (48, 8)  b_ref: (1, 8)  o_ref: (tm, 8)
    acc = jnp.dot(x_ref[...], w_ref[...], preferred_element_type=jnp.float32)
    o_ref[...] = (acc + b_ref[...]).astype(o_ref.dtype)


def dummy_frame_encoder(x, weight, bias, *, row_tile=ROW_TILE, force_pallas=False):
    """x: (N, ...) float32 with prod(...) == 48; weight: (5, 48); bias: (5,).

    Returns (N, 5), matching nn.Linear(48, 5) applied to x.view(N, -1).
    """
    n = x.shape[0]
    x_flat = x.reshape(n, -1)                                 # glue reshape
    assert x_flat.shape[1] == IN_FEATURES

    # Small-N fast path: fixed pallas_call overhead dominates below ~1 MiB.
    if not force_pallas and n * IN_FEATURES * x_flat.dtype.itemsize < SMALL_N_BYTES:
        return x_flat @ weight.T + bias

    # Row tile: multiple of 8 sublanes, capped at row_tile; additionally keep
    # the grid >= MIN_GRID_STEPS once N is large so the "parallel" row axis
    # splits across both v7x TensorCores with room to double-buffer.
    tm = min(row_tile, _round_up(n, SUBLANE))
    tm_cap = max(MIN_ROW_TILE, _round_up(pl.cdiv(n, MIN_GRID_STEPS), SUBLANE))
    tm = min(tm, tm_cap)
    grid = (pl.cdiv(n, tm),)   # ragged last block handled by Pallas masking

    # Tiny, lane-narrow resident parameters (zero-padded 5 -> 8 output lanes).
    w_pad = jnp.pad(weight.T, ((0, 0), (0, OUT_LANE - EMBEDDING_SIZE)))   # (48, 8)
    b_pad = jnp.pad(bias.reshape(1, EMBEDDING_SIZE),
                    ((0, 0), (0, OUT_LANE - EMBEDDING_SIZE)))             # (1, 8)

    out_padded = pl.pallas_call(
        _linear_kernel,
        out_shape=jax.ShapeDtypeStruct((n, OUT_LANE), x_flat.dtype),
        grid_spec=pl.GridSpec(
            grid=grid,
            in_specs=[
                # x: tiled over rows, double-buffered by the Pallas pipeline.
                pl.BlockSpec((tm, IN_FEATURES), lambda i: (i, 0)),
                # W, b: full-array blocks, resident across all row tiles.
                pl.BlockSpec((IN_FEATURES, OUT_LANE), lambda i: (0, 0)),
                pl.BlockSpec((1, OUT_LANE), lambda i: (0, 0)),
            ],
            out_specs=pl.BlockSpec((tm, OUT_LANE), lambda i: (i, 0)),
        ),
        compiler_params=pltpu.CompilerParams(
            dimension_semantics=("parallel",)),   # shards rows across TCs on v7x
    )(x_flat, w_pad, b_pad)

    # Strip the 3 zero output lanes outside the kernel (20B useful / 32B row).
    return out_padded[:, :EMBEDDING_SIZE]


if __name__ == "__main__":
    key = jax.random.PRNGKey(0)
    kx, kw, kb, kx2 = jax.random.split(key, 4)

    # Deterministic parameters (same shapes as nn.Linear(48, 5)).
    bound = 1.0 / (IN_FEATURES ** 0.5)
    weight = jax.random.uniform(kw, (EMBEDDING_SIZE, IN_FEATURES),
                                minval=-bound, maxval=bound, dtype=jnp.float32)
    bias = jax.random.uniform(kb, (EMBEDDING_SIZE,),
                              minval=-bound, maxval=bound, dtype=jnp.float32)

    # 1) Module-sized input: (N=2, C=3, H=4, W=4) -> 48 features per frame.
    #    Force the Pallas path so the kernel itself is exercised.
    x = jax.random.normal(kx, (2, 3, 4, 4), dtype=jnp.float32)
    out = dummy_frame_encoder(x, weight, bias, force_pallas=True)
    jax.block_until_ready(out)
    ref = x.reshape(x.shape[0], -1) @ weight.T + bias
    assert out.shape == (2, EMBEDDING_SIZE)
    assert jnp.allclose(out, ref, atol=1e-5, rtol=1e-5)

    # 2) Larger batch with a ragged trailing block (600 rows, tm=512) to
    #    exercise the no-prepad / masked-last-block path.
    x2 = jax.random.normal(kx2, (600, 3, 4, 4), dtype=jnp.float32)
    out2 = dummy_frame_encoder(x2, weight, bias, force_pallas=True)
    jax.block_until_ready(out2)
    ref2 = x2.reshape(x2.shape[0], -1) @ weight.T + bias
    assert out2.shape == (600, EMBEDDING_SIZE)
    assert jnp.allclose(out2, ref2, atol=1e-5, rtol=1e-5)

    # 3) Small-N fast path (default auto-select) still matches the reference.
    out3 = dummy_frame_encoder(x, weight, bias)
    jax.block_until_ready(out3)
    assert jnp.allclose(out3, ref, atol=1e-5, rtol=1e-5)

    print("KERNEL_OK")
</pallas_src>

<mosaic_0001>
module attributes {stable_mosaic.version = 11 : i64} {
  func.func @_linear_kernel(%arg0: i32, %arg1: memref<8x48xf32, #tpu.memory_space<vmem>>, %arg2: memref<48x8xf32, #tpu.memory_space<vmem>>, %arg3: memref<1x8xf32, #tpu.memory_space<vmem>>, %arg4: memref<8x8xf32, #tpu.memory_space<vmem>>) attributes {dimension_semantics = [#tpu.dimension_semantics<parallel>], iteration_bounds = array<i64: 1>, scalar_prefetch = 0 : i64, scratch_operands = 0 : i64, tpu.core_type = #tpu.core_type<tc>, window_params = [{transform_indices = @transform_0, window_bounds = array<i64: 8, 48>}, {pipeline_mode = #tpu.pipeline_mode<synchronous>, transform_indices = @transform_1, window_bounds = array<i64: 48, 8>}, {pipeline_mode = #tpu.pipeline_mode<synchronous>, transform_indices = @transform_2, window_bounds = array<i64: 1, 8>}, {transform_indices = @transform_3, window_bounds = array<i64: 8, 8>}]} {
    %c0 = arith.constant 0 : index
    %c0_0 = arith.constant 0 : index
    %0 = vector.load %arg1[%c0, %c0_0] : memref<8x48xf32, #tpu.memory_space<vmem>>, vector<8x48xf32>
    %c0_1 = arith.constant 0 : index
    %c0_2 = arith.constant 0 : index
    %1 = vector.load %arg2[%c0_1, %c0_2] : memref<48x8xf32, #tpu.memory_space<vmem>>, vector<48x8xf32>
    %cst = arith.constant dense<0.000000e+00> : vector<8x8xf32>
    %2 = tpu.matmul %0, %1, %cst {dimension_numbers = #tpu.dot_dimension_numbers<[1], [0], [0], [1], [0, 0, 1, 1], [], []>} : vector<8x48xf32>, vector<48x8xf32>, vector<8x8xf32> -> vector<8x8xf32>
    %c0_3 = arith.constant 0 : index
    %c0_4 = arith.constant 0 : index
    %3 = vector.load %arg3[%c0_3, %c0_4] : memref<1x8xf32, #tpu.memory_space<vmem>>, vector<1x8xf32>
    %4 = vector.broadcast %3 : vector<1x8xf32> to vector<8x8xf32>
    %5 = arith.addf %2, %4 : vector<8x8xf32>
    %c0_5 = arith.constant 0 : index
    %c0_6 = arith.constant 0 : index
    %6 = vector.load %arg4[%c0_5, %c0_6] : memref<8x8xf32, #tpu.memory_space<vmem>>, vector<8x8xf32>
    tpu.vector_store %arg4[%c0_5, %c0_6], %5 {strides = array<i32>} : memref<8x8xf32, #tpu.memory_space<vmem>>, vector<8x8xf32>,
    return
  }
  func.func @transform_0(%arg0: i32) -> (i32, i32) {
    %c0_i32 = arith.constant 0 : i32
    %c0_i32_0 = arith.constant 0 : i32
    return %arg0, %c0_i32 : i32, i32
  }
  func.func @transform_1(%arg0: i32) -> (i32, i32) {
    %c0_i32 = arith.constant 0 : i32
    %c0_i32_0 = arith.constant 0 : i32
    %c0_i32_1 = arith.constant 0 : i32
    return %c0_i32, %c0_i32_0 : i32, i32
  }
  func.func @transform_2(%arg0: i32) -> (i32, i32) {
    %c0_i32 = arith.constant 0 : i32
    %c0_i32_0 = arith.constant 0 : i32
    %c0_i32_1 = arith.constant 0 : i32
    return %c0_i32, %c0_i32_0 : i32, i32
  }
  func.func @transform_3(%arg0: i32) -> (i32, i32) {
    %c0_i32 = arith.constant 0 : i32
    %c0_i32_0 = arith.constant 0 : i32
    return %arg0, %c0_i32 : i32, i32
  }
}

</mosaic_0001>

<bundles_post_ra>
// kernel: tpu_custom_call.1
= control target key start
LH: loop header
LB: loop body
LE: loop exit
PB: predicated region body
PF: predicated region fallthrough
CT: control target
= control target key end

     0   :  { %8 = vsyncpa [#allocation3], 0  ;;  %v184_v2 = vmov 0.0|0.0   ;;  %vm185_vm0 = vmmov 0   ;;  %v186_v6 = vmov 0.0   ;;  %vm29_vm1 = vcmask 392192   ;;  %s246_s0 = inlined_call_operand.vmem [shape: f32[2,48], index: 0, kind: input, shape index: {}]   ;;  %s247_s1 = inlined_call_operand.vmem [shape: f32[48,8], index: 1, kind: input, shape index: {}]   ;;  %s248_s2 = inlined_call_operand.vmem [shape: f32[1,8], index: 2, kind: input, shape index: {}]   ;;  %s249_s3 = inlined_call_operand.hbm [shape: f32[2,8], index: 3, kind: output, shape index: {}]  }
   0x1   :  { %v16_v0 = vld [vmem:[%s247_s1] sm:$0xff]  ;;  %v17_v1 = vld [vmem:[%s247_s1 + $0x8] sm:$0xff]  ;;  %145 = vmatprep.subr.bf16.mxu0 %v184_v2  ;;  %v18_v4 = vld [vmem:[%s247_s1 + $0x10] sm:$0xff]  ;;  %142 = vmatprep.mubr.msk.f32.mxu0 %vm185_vm0, %v186_v6  ;;  %vm103_vm2 = vcmask 64512  }
   0x2   :  { %v146_v3 = vpack.c.bf16 %v17_v1, %v16_v0  ;;  %v19_v5 = vld [vmem:[%s247_s1 + $0x18] sm:$0xff]  ;;  %v20_v8 = vld [vmem:[%s247_s1 + $0x20] sm:$0xff]  ;;  %v21_v9 = vld [vmem:[%s247_s1 + $0x28] sm:$0xff] }
   0x3   :  { %v149_v7 = vpack.c.bf16 %v19_v5, %v18_v4  ;;  %v152_v10 = vpack.c.bf16 %v21_v9, %v20_v8  ;;  %v15_v11 = vld [vmem:[%s246_s0] sm:$0xff] }
   0x4   :  { %147 = vmatpush3.bf16.msra.mxu0 %v146_v3  ;;  %v121_v12 = vld [vmem:[%s248_s2] ss:$0 sm:$0xff] }
   0x5   :  { %148 = vmatprep.subr.bf16.mxu0 %v184_v2 }
   0x8   :  { %150 = vmatpush3.bf16.msra.mxu0 %v149_v7 }
   0x9   :  { %151 = vmatprep.subr.bf16.mxu0 %v184_v2 }
   0xc   :  { %153 = vmatpush3.bf16.msra.mxu0 %v152_v10 }
   0xf   :  { %143 = vmatmul.mubr.msk.f32.vlgmr.msra.gmra.mrb[0].mxu0 %vm29_vm1, %v15_v11 }
  0xe2   :  { %v99_v13 = vpop.f32.mrb[0].mxu0 }
  0xe3   :  { %v100_v14 = vadd.f32 %v121_v12, %v99_v13  ;;  %v144_v15 = vpop.f32.mrb[1].mxu0 }
  0xe5   :  { %104 = vst.msk [vmem:[#allocation2] sm:$0xff] %vm103_vm2, %v100_v14 }
  0xe6   :  { %109 = vsyncadd [#allocation3], 96  ;;  %s187_s1 = smov [#allocation2]  }
  0xe7   :  { %s110_s28 = sshll.u32 %s187_s1, 4  ;;  %s111_s28 = int_to_ptr.vmem [resolvable:$true] %s110_s28 }
  0xe8   :  { %s160_s29 = scalar_lea.vmem %s111_s28, 32  ;;  %s164_s30 = scalar_lea.vmem %s111_s28, 128 }
  0xe9   :  { %p161_p0 = scmp.ne.s32.totalorder %s111_s28, %s160_s29  ;;  %p165_p1 = scmp.lt.s32.totalorder %s111_s28, %s111_s28 }
  0xea   :  { %p166_p2 = scmp.lt.s32.totalorder %s164_s30, %s160_s29 }
  0xec   :  { %p167_p3 = por %p166_p2, %p165_p1 }
  0xee   :  { %p168_p4 = pnand %p167_p3, %p161_p0 }
  0xf0   :  { %171 = shalt.err (!%p168_p4)
}
  0xf1   :  { %s172_s2 = scalar_lea.hbm %s249_s3, 32 }
  0xf2   :  { %p173_p5 = scmp.ne.s32.totalorder %s249_s3, %s172_s2  ;;  %p176_p6 = scmp.lt.u32.totalorder %s172_s2, %s249_s3 }
  0xf4   :  { %p178_p7 = pnand %p176_p6, %p173_p5 }
  0xf6   :  { %181 = shalt.err (!%p178_p7)
}
  0xf7   :  { %s188_s9 = smov 32   ;;  %s189_s10 = smov 2  }
  0xf8   :  { %116 = dma.vmem_to_hbm [thread:$0]  %s111_s28, 32, %s249_s3, [#allocation3], %s188_s9, %s188_s9, %s189_s10  }
  0xf9   :  { %182 = dma.done.wait [#allocation3], 128  }
  0xfa   :  { %183 = vsyncadd [#allocation3], 4294967168 }
  0xfb   :  { %120 = vsyncpa [#allocation3], 1 }

</bundles_post_ra>
